<compile_context>
chip_gen: v5e
topology: v5e:2x2
jax: 0.10.0
libtpu: 0.0.40
codegen_flags: <defaults>
</compile_context>

<pallas_src>
import functools

import jax
import jax.numpy as jnp
import numpy as np
from jax.experimental import pallas as pl
from jax.experimental.pallas import tpu as pltpu

LANE = 128
VALS_PER_RECORD = 4                          # (open, high, low, close)
RECORDS_PER_ROW = LANE // VALS_PER_RECORD    # 32


def _round_up(x, m):
    return ((x + m - 1) // m) * m


def _tail_loss(pred, target, inv_n, two_inv_b):
    """Plain-JAX contribution of a small [b,4] chunk, pre-scaled by 1/(4B), 2/B."""
    p = pred.astype(jnp.float32)
    t = target.astype(jnp.float32)
    d = p - t
    relu = lambda x: jnp.maximum(x, 0.0)
    cons = (relu(p[:, 2] - p[:, 1])      # low   - high
            + relu(p[:, 0] - p[:, 1])    # open  - high
            + relu(p[:, 2] - p[:, 0])    # low   - open
            + relu(p[:, 3] - p[:, 1])    # close - high
            + relu(p[:, 2] - p[:, 3]))   # low   - close
    return jnp.sum(d * d) * jnp.float32(inv_n) + jnp.sum(cons) * jnp.float32(two_inv_b)


def _make_kernel(inv_n, two_inv_b, rows, tr, ragged):
    """Build the per-block kernel. inv_n / two_inv_b / rows / tr are static."""
    inv_n = float(inv_n)
    two_inv_b = float(two_inv_b)

    def kernel(pred_ref, target_ref, out_ref):
        # pred_ref / target_ref: (tr, 128) blocks; lanes cycle (o, h, l, c).
        p = pred_ref[...].astype(jnp.float32)
        t = target_ref[...].astype(jnp.float32)
        d = p - t

        # Align high / low / close onto the "open" lanes (lane % 4 == 0) via
        # lane rolls (XLU slot, off the VPU critical path). roll(x, 128-k)
        # reads lane+k; the wrap only touches lanes >= 125 which are never
        # "open" lanes and get masked out below.
        nl = p.shape[1]
        p_h = pltpu.roll(p, shift=nl - 1, axis=1)   # lane+1 -> high
        p_l = pltpu.roll(p, shift=nl - 2, axis=1)   # lane+2 -> low
        p_c = pltpu.roll(p, shift=nl - 3, axis=1)   # lane+3 -> close

        relu = lambda x: jnp.maximum(x, 0.0)
        cons = (relu(p_l - p_h)      # low   - high
                + relu(p - p_h)      # open  - high
                + relu(p_l - p)      # low   - open
                + relu(p_c - p_h)    # close - high
                + relu(p_l - p_c))   # low   - close

        # (1, 128) mask: 2/B on "open" lanes, 0 elsewhere; broadcasts over
        # sublanes -> one multiply per vreg instead of iota/mod/select per vreg.
        lane = jax.lax.broadcasted_iota(jnp.int32, (1, LANE), 1)
        lane_mask = jnp.where((lane & 3) == 0,
                              jnp.float32(two_inv_b), jnp.float32(0.0))

        # Single fused contribution -> one reduction per block.
        contrib = d * d * jnp.float32(inv_n) + cons * lane_mask

        if ragged:
            # Last grid block extends past the real row count; OOB block data
            # is undefined, so zero those rows (static Python branch: this
            # code only exists when rows % tr != 0).
            valid = rows - pl.program_id(0) * tr
            row = jax.lax.broadcasted_iota(jnp.int32, p.shape, 0)
            contrib = jnp.where(row < valid, contrib, 0.0)

        partial = jnp.sum(contrib)
        out_ref[...] = jnp.full(out_ref.shape, partial, dtype=jnp.float32)

    return kernel


@functools.partial(jax.jit, static_argnames=("block_rows",))
def price_prediction_loss(pred, target, *, block_rows=2048):
    """pred, target: [B, 4] (open, high, low, close). Returns f32 scalar loss."""
    assert pred.shape == target.shape and pred.ndim == 2
    assert pred.shape[1] == VALS_PER_RECORD
    B = pred.shape[0]
    assert B > 0, "PricePredictionLoss is undefined for an empty batch"

    inv_n = 1.0 / (B * VALS_PER_RECORD)   # MSE mean over 4B elements
    two_inv_b = 2.0 / B                   # 2 * mean over B constraint terms

    B_main = (B // RECORDS_PER_ROW) * RECORDS_PER_ROW
    B_tail = B - B_main

    if B_main == 0:
        # Fewer than 32 records: a single vreg of work, plain JAX is cheaper
        # than a Pallas launch.
        return _tail_loss(pred, target, inv_n, two_inv_b)

    rows = B_main // RECORDS_PER_ROW
    itemsize = jnp.dtype(pred.dtype).itemsize
    # Sublane packing: f32 -> 8 rows/vreg, bf16 -> 16, int8/fp8 -> 32.
    align = 8 * max(1, 4 // max(itemsize, 1))

    # Keep >= 2 grid steps when there's enough work so the "parallel" grid
    # axis can shard across v7x's two TensorCores; cap at block_rows.
    half = _round_up(max((rows + 1) // 2, 1), align)
    tr = max(align, _round_up(min(block_rows, half), align))
    g = -(-rows // tr)
    ragged = (rows % tr) != 0

    def lane_dense(x):
        # Free bitcast when B % 32 == 0; otherwise slice off the aligned
        # prefix (the <32-record tail is handled in plain JAX below).
        if B_tail:
            x = x[:B_main]
        return x.reshape(rows, LANE)

    p2 = lane_dense(pred)     # native dtype; cast to f32 happens in-kernel
    t2 = lane_dense(target)

    kernel = _make_kernel(inv_n, two_inv_b, rows, tr, ragged)

    bytes_accessed = int(2 * rows * LANE * itemsize + g * LANE * 4)
    cost = pl.CostEstimate(flops=20 * rows * LANE, transcendentals=0,
                           bytes_accessed=bytes_accessed)

    # 2 inputs x 2 pipeline buffers x one block (+ output & headroom).
    needed = 2 * 2 * tr * LANE * itemsize + 4 * LANE * 4 + (1 << 20)
    vmem_limit = int(min(max(needed, 32 << 20), 64 << 20))

    partials = pl.pallas_call(
        kernel,
        out_shape=jax.ShapeDtypeStruct((g, 1, LANE), jnp.float32),
        grid_spec=pltpu.PrefetchScalarGridSpec(
            num_scalar_prefetch=0,
            grid=(g,),
            in_specs=[
                pl.BlockSpec((tr, LANE), lambda i: (i, 0)),
                pl.BlockSpec((tr, LANE), lambda i: (i, 0)),
            ],
            out_specs=pl.BlockSpec((1, 1, LANE), lambda i: (i, 0, 0)),
        ),
        compiler_params=pltpu.CompilerParams(
            dimension_semantics=("parallel",),
            vmem_limit_bytes=vmem_limit,
        ),
        cost_estimate=cost,
    )(p2, t2)

    # Tiny final combine in plain JAX (also pairwise-ish f32 across blocks).
    loss = jnp.sum(partials[:, 0, 0])

    if B_tail:
        loss = loss + _tail_loss(pred[B_main:], target[B_main:], inv_n, two_inv_b)

    return loss


def _reference_loss(pred, target):
    pred = pred.astype(jnp.float32)
    target = target.astype(jnp.float32)
    mse = jnp.mean((pred - target) ** 2)
    relu = lambda x: jnp.maximum(x, 0.0)
    hl = jnp.mean(relu(pred[:, 2] - pred[:, 1]))
    oh = jnp.mean(relu(pred[:, 0] - pred[:, 1]))
    ol = jnp.mean(relu(pred[:, 2] - pred[:, 0]))
    ch = jnp.mean(relu(pred[:, 3] - pred[:, 1]))
    cl = jnp.mean(relu(pred[:, 2] - pred[:, 3]))
    return mse + 2.0 * (hl + oh + ol + cl + ch)


if __name__ == "__main__":
    key = jax.random.PRNGKey(0)

    cases = [
        dict(B=64, dtype=jnp.float32, block_rows=2048),    # B % 32 == 0 fast path
        dict(B=100, dtype=jnp.float32, block_rows=8),      # ragged block + JAX tail
        dict(B=1000, dtype=jnp.float32, block_rows=8),     # multi-block grid + ragged + tail
        dict(B=64, dtype=jnp.bfloat16, block_rows=2048),   # sub-32-bit native-dtype path
    ]

    for cfg in cases:
        key, k1, k2 = jax.random.split(key, 3)
        pred = jax.random.normal(k1, (cfg["B"], 4), dtype=jnp.float32).astype(cfg["dtype"])
        target = jax.random.normal(k2, (cfg["B"], 4), dtype=jnp.float32).astype(cfg["dtype"])

        loss = price_prediction_loss(pred, target, block_rows=cfg["block_rows"])
        jax.block_until_ready(loss)

        ref = _reference_loss(pred, target)
        np.testing.assert_allclose(np.asarray(loss), np.asarray(ref),
                                   rtol=1e-5, atol=1e-5)

    print("KERNEL_OK")
</pallas_src>

<mosaic_0001>
module attributes {stable_mosaic.version = 11 : i64} {
  func.func @kernel(%arg0: i32, %arg1: memref<8x128xf32, #tpu.memory_space<vmem>>, %arg2: memref<8x128xf32, #tpu.memory_space<vmem>>, %arg3: memref<1x1x128xf32, #tpu.memory_space<vmem>>) attributes {dimension_semantics = [#tpu.dimension_semantics<parallel>], iteration_bounds = array<i64: 1>, scalar_prefetch = 0 : i64, scratch_operands = 0 : i64, tpu.core_type = #tpu.core_type<tc>, window_params = [{transform_indices = @transform_0, window_bounds = array<i64: 8, 128>}, {transform_indices = @transform_1, window_bounds = array<i64: 8, 128>}, {transform_indices = @transform_2, window_bounds = array<i64: 1, 1, 128>}]} {
    %c0 = arith.constant 0 : index
    %c0_0 = arith.constant 0 : index
    %0 = vector.load %arg1[%c0, %c0_0] : memref<8x128xf32, #tpu.memory_space<vmem>>, vector<8x128xf32>
    %c0_1 = arith.constant 0 : index
    %c0_2 = arith.constant 0 : index
    %1 = vector.load %arg2[%c0_1, %c0_2] : memref<8x128xf32, #tpu.memory_space<vmem>>, vector<8x128xf32>
    %2 = arith.subf %0, %1 : vector<8x128xf32>
    %c127_i32 = arith.constant 127 : i32
    %3 = tpu.dynamic_rotate %0 by %c127_i32 dim 1 : vector<8x128xf32>, i32 -> vector<8x128xf32>
    %c126_i32 = arith.constant 126 : i32
    %4 = tpu.dynamic_rotate %0 by %c126_i32 dim 1 : vector<8x128xf32>, i32 -> vector<8x128xf32>
    %c125_i32 = arith.constant 125 : i32
    %5 = tpu.dynamic_rotate %0 by %c125_i32 dim 1 : vector<8x128xf32>, i32 -> vector<8x128xf32>
    %6 = arith.subf %4, %3 : vector<8x128xf32>
    %cst = arith.constant 0.000000e+00 : f32
    %7 = vector.broadcast %cst : f32 to vector<8x128xf32>
    %8 = arith.maximumf %6, %7 : vector<8x128xf32>
    %9 = arith.subf %0, %3 : vector<8x128xf32>
    %cst_3 = arith.constant 0.000000e+00 : f32
    %10 = vector.broadcast %cst_3 : f32 to vector<8x128xf32>
    %11 = arith.maximumf %9, %10 : vector<8x128xf32>
    %12 = arith.addf %8, %11 : vector<8x128xf32>
    %13 = arith.subf %4, %0 : vector<8x128xf32>
    %cst_4 = arith.constant 0.000000e+00 : f32
    %14 = vector.broadcast %cst_4 : f32 to vector<8x128xf32>
    %15 = arith.maximumf %13, %14 : vector<8x128xf32>
    %16 = arith.addf %12, %15 : vector<8x128xf32>
    %17 = arith.subf %5, %3 : vector<8x128xf32>
    %cst_5 = arith.constant 0.000000e+00 : f32
    %18 = vector.broadcast %cst_5 : f32 to vector<8x128xf32>
    %19 = arith.maximumf %17, %18 : vector<8x128xf32>
    %20 = arith.addf %16, %19 : vector<8x128xf32>
    %21 = arith.subf %4, %5 : vector<8x128xf32>
    %cst_6 = arith.constant 0.000000e+00 : f32
    %22 = vector.broadcast %cst_6 : f32 to vector<8x128xf32>
    %23 = arith.maximumf %21, %22 : vector<8x128xf32>
    %24 = arith.addf %20, %23 : vector<8x128xf32>
    %25 = tpu.iota {dimensions = array<i32: 1>} : vector<1x128xi32>
    %c3_i32 = arith.constant 3 : i32
    %26 = vector.broadcast %c3_i32 : i32 to vector<1x128xi32>
    %27 = arith.andi %25, %26 : vector<1x128xi32>
    %c0_i32 = arith.constant 0 : i32
    %28 = vector.broadcast %c0_i32 : i32 to vector<1x128xi32>
    %29 = arith.cmpi eq, %27, %28 : vector<1x128xi32>
    %cst_7 = arith.constant 3.125000e-02 : f32
    %cst_8 = arith.constant 0.000000e+00 : f32
    %30 = vector.broadcast %cst_7 : f32 to vector<1x128xf32>
    %31 = vector.broadcast %cst_8 : f32 to vector<1x128xf32>
    %32 = arith.select %29, %30, %31 : vector<1x128xi1>, vector<1x128xf32>
    %33 = arith.mulf %2, %2 : vector<8x128xf32>
    %cst_9 = arith.constant 3.906250e-03 : f32
    %34 = vector.broadcast %cst_9 : f32 to vector<8x128xf32>
    %35 = arith.mulf %33, %34 : vector<8x128xf32>
    %36 = vector.broadcast %32 : vector<1x128xf32> to vector<8x128xf32>
    %37 = arith.mulf %24, %36 : vector<8x128xf32>
    %38 = arith.addf %35, %37 : vector<8x128xf32>
    %c8_i32 = arith.constant 8 : i32
    %39 = arith.muli %arg0, %c8_i32 : i32
    %c2_i32 = arith.constant 2 : i32
    %40 = arith.subi %c2_i32, %39 : i32
    %41 = tpu.iota {dimensions = array<i32: 0>} : vector<8x128xi32>
    %42 = vector.broadcast %40 : i32 to vector<8x128xi32>
    %43 = arith.cmpi slt, %41, %42 : vector<8x128xi32>
    %cst_10 = arith.constant 0.000000e+00 : f32
    %44 = vector.broadcast %cst_10 : f32 to vector<8x128xf32>
    %45 = arith.select %43, %38, %44 : vector<8x128xi1>, vector<8x128xf32>
    %46 = vector.shape_cast %45 : vector<8x128xf32> to vector<1x8x128xf32>
    %cst_11 = arith.constant dense<0.000000e+00> : vector<1xf32>
    %47 = vector.multi_reduction <add>, %46, %cst_11 [1, 2] : vector<1x8x128xf32> to vector<1xf32>
    %48 = vector.shape_cast %47 : vector<1xf32> to vector<1x1x1xf32>
    %49 = vector.extract %48[0, 0, 0] : f32 from vector<1x1x1xf32>
    %50 = vector.broadcast %49 : f32 to vector<1x1x128xf32>
    %c0_12 = arith.constant 0 : index
    %c0_13 = arith.constant 0 : index
    %c0_14 = arith.constant 0 : index
    %51 = vector.load %arg3[%c0_12, %c0_13, %c0_14] : memref<1x1x128xf32, #tpu.memory_space<vmem>>, vector<1x1x128xf32>
    tpu.vector_store %arg3[%c0_12, %c0_13, %c0_14], %50 {strides = array<i32>} : memref<1x1x128xf32, #tpu.memory_space<vmem>>, vector<1x1x128xf32>,
    return
  }
  func.func @transform_0(%arg0: i32) -> (i32, i32) {
    %c0_i32 = arith.constant 0 : i32
    %c0_i32_0 = arith.constant 0 : i32
    return %arg0, %c0_i32 : i32, i32
  }
  func.func @transform_1(%arg0: i32) -> (i32, i32) {
    %c0_i32 = arith.constant 0 : i32
    %c0_i32_0 = arith.constant 0 : i32
    return %arg0, %c0_i32 : i32, i32
  }
  func.func @transform_2(%arg0: i32) -> (i32, i32, i32) {
    %c0_i32 = arith.constant 0 : i32
    %c0_i32_0 = arith.constant 0 : i32
    %c0_i32_1 = arith.constant 0 : i32
    return %arg0, %c0_i32, %c0_i32_0 : i32, i32, i32
  }
}

</mosaic_0001>

<bundles_post_ra>
// kernel: price_prediction_loss.1
= control target key start
LH: loop header
LB: loop body
LE: loop exit
PB: predicated region body
PF: predicated region fallthrough
CT: control target
= control target key end

     0   :  { %s140_s0 = inlined_call_operand.vmem [shape: f32[2,128], index: 0, kind: input, shape index: {}]   ;;  %s141_s1 = inlined_call_operand.vmem [shape: f32[2,128], index: 1, kind: input, shape index: {}]   ;;  %s142_s2 = inlined_call_operand.hbm [shape: f32[1,1,128], index: 2, kind: output, shape index: {}]  }
   0x1   :  { %v12_v0 = vld [vmem:[%s140_s0] sm:$0xff] }
   0x2   :  { %7 = vsyncpa [#allocation3], 0  ;;  %s111_s11 = smov 125   ;;  %s112_s12 = smov 127   ;;  %v35_v2 = vlaneseq  ;;  %v13_v7 = vld [vmem:[%s141_s1] sm:$0xff]  ;;  %v114_v23 = vmov 0.0  }
   0x3   :  { %19 = vrot.lane.b32.xlu1 %v12_v0, %s111_s11  ;;  %15 = vrot.lane.b32.xlu0 %v12_v0, %s112_s12  ;;  %s113_s13 = smov 126   ;;  %v14_v14 = vsub.f32 %v12_v0, %v13_v7  ;;  %s115_s0 = smov [#allocation2]  }
   0x4   :  { %v36_v3 = vand.u32 127, %v35_v2  ;;  %v47_v25 = vshrl.u32 %v35_v2, 7  ;;  %s67_s1 = sshll.u32 %s115_s0, 4  ;;  %s69_s18 = sshll.u32 %s142_s2, 4  ;;  %s68_s1 = int_to_ptr.vmem [resolvable:$true] %s67_s1  ;;  %s70_s18 = int_to_ptr.hbm [resolvable:$true] %s69_s18 }
   0x5   :  { %v40_v20 = vmul.f32 %v14_v14, %v14_v14 }
   0x6   :  { %v37_v10 = vand.u32 3, %v36_v3  ;;  %vm49_vm1 = vcmp.lt.s32.totalorder %v47_v25, 2 }
   0x7   :  { %v41_v27 = vmul.f32 0.00390625, %v40_v20 }
   0x8   :  { %vm38_vm0 = vcmp.eq.s32.totalorder %v37_v10, 0 }
   0x9   :  { %v39_v24 = vsel %vm38_vm0, 0.03125, %v114_v23 }
   0xb   :  { %17 = vrot.lane.b32.xlu0 %v12_v0, %s113_s13 }
  0x75   :  { %v16_v1 = vpop.permute.xlu0 %15  ;;  %v20_v5 = vpop.permute.xlu1 %19 }
  0x76   :  { %v23_v4 = vsub.f32 %v12_v0, %v16_v1  ;;  %v29_v12 = vsub.f32 %v20_v5, %v16_v1 }
  0x78   :  { %v24_v11 = vmax.f32 %v23_v4, 0.0  ;;  %v30_v18 = vmax.f32 %v29_v12, 0.0 }
  0x7d   :  { %v18_v6 = vpop.permute.xlu0 %17 }
  0x7e   :  { %v21_v8 = vsub.f32 %v18_v6, %v16_v1  ;;  %v26_v9 = vsub.f32 %v18_v6, %v12_v0  ;;  %v32_v17 = vsub.f32 %v18_v6, %v20_v5 }
  0x80   :  { %v22_v13 = vmax.f32 %v21_v8, 0.0  ;;  %v27_v16 = vmax.f32 %v26_v9, 0.0  ;;  %v33_v22 = vmax.f32 %v32_v17, 0.0 }
  0x82   :  { %v25_v15 = vadd.f32 %v24_v11, %v22_v13 }
  0x84   :  { %v28_v19 = vadd.f32 %v27_v16, %v25_v15 }
  0x86   :  { %v31_v21 = vadd.f32 %v30_v18, %v28_v19 }
  0x88   :  { %v34_v26 = vadd.f32 %v33_v22, %v31_v21 }
  0x8a   :  { %v42_v28 = vmul.f32 %v39_v24, %v34_v26 }
  0x8c   :  { %v43_v29 = vadd.f32 %v42_v28, %v41_v27 }
  0x8e   :  { %v50_v30 = vsel %vm49_vm1, %v43_v29, 0.0 }
  0x8f   :  { %51 = vadd.xlane.f32.xlu1 %v50_v30 }
 0x102   :  { %v52_v31 = vpop.xlane.xlu1 %51 }
 0x103   :  { %v53_v32 = vrot.slane %v52_v31, 4 }
 0x105   :  { %v54_v33 = vadd.f32 %v53_v32, %v52_v31 }
 0x107   :  { %v55_v34 = vrot.slane %v54_v33, 2 }
 0x109   :  { %v56_v35 = vadd.f32 %v55_v34, %v54_v33 }
 0x10b   :  { %v57_v36 = vrot.slane %v56_v35, 1 }
 0x10d   :  { %v58_v37 = vadd.f32 %v57_v36, %v56_v35 }
 0x10f   :  { %78 = vpush %v58_v37 }
 0x140   :  { %s79_s19 = spop %78 }
 0x141   :  { %v60_v38 = vstv %s79_s19 }
 0x142   :  { %61 = vst [vmem:[#allocation2] sm:$0x1] %v60_v38 }
 0x143   :  { %72 = dma.vmem_to_hbm [thread:$0]  %s68_s1, 16, %s70_s18, [#allocation3]  }
 0x144   :  { %109 = dma.done.wait [#allocation3], 16  }
 0x145   :  { %110 = vsyncadd [#allocation3], 4294967280 }
 0x146   :  { %77 = vsyncpa [#allocation3], 1 }

</bundles_post_ra>
